<compile_context>
chip_gen: v6e
topology: v6e:2x2x1
jax: 0.10.0
libtpu: 0.0.40
codegen_flags: <defaults>
</compile_context>

<pallas_src>
import numpy as np
import jax
import jax.numpy as jnp
from jax.experimental import pallas as pl
from jax.experimental.pallas import tpu as pltpu


# ------------------------------------------------------------------
# Parameter setup (deterministic numpy "glue")
# ------------------------------------------------------------------
def _round_up(x, m):
    return ((x + m - 1) // m) * m


def hz_to_mel_htk(f):
    return 2595.0 * np.log10(1.0 + np.asarray(f, dtype=np.float64) / 700.0)


def mel_to_hz_htk(m):
    return 700.0 * (10.0 ** (np.asarray(m, dtype=np.float64) / 2595.0) - 1.0)


def mel_filterbank_htk(sr, n_fft, n_mels, fmin, fmax):
    """Reimplementation of librosa.filters.mel(htk=True, norm='slaney')."""
    if fmax is None:
        fmax = sr / 2.0
    n_freq = 1 + n_fft // 2
    fftfreqs = np.linspace(0.0, sr / 2.0, n_freq)
    mels = np.linspace(hz_to_mel_htk(fmin), hz_to_mel_htk(fmax), n_mels + 2)
    mel_f = mel_to_hz_htk(mels)

    fdiff = np.diff(mel_f)
    ramps = mel_f[:, None] - fftfreqs[None, :]
    lower = -ramps[:-2] / fdiff[:-1, None]
    upper = ramps[2:] / fdiff[1:, None]
    weights = np.maximum(0.0, np.minimum(lower, upper))

    enorm = 2.0 / (mel_f[2: n_mels + 2] - mel_f[:n_mels])   # slaney norm
    weights *= enorm[:, None]
    return weights.astype(np.float32)                        # [n_mels, n_freq]


def hann_window_periodic(n):
    # torch.hann_window(N) default periodic=True
    k = np.arange(n, dtype=np.float64)
    return 0.5 - 0.5 * np.cos(2.0 * np.pi * k / n)


def build_fused_dft(n_fft, window, f_pad):
    """Fused windowed real-DFT matrix [n_fft, 2*f_pad]:
       cols [0, n_freq)           -> cos (real) part
       cols [f_pad, f_pad+n_freq) -> -sin (imag) part, rest zero."""
    n_freq = 1 + n_fft // 2
    n = np.arange(n_fft, dtype=np.float64)[:, None]
    f = np.arange(n_freq, dtype=np.float64)[None, :]
    ang = 2.0 * np.pi * n * f / n_fft
    fused = np.zeros((n_fft, 2 * f_pad), dtype=np.float32)
    fused[:, :n_freq] = np.cos(ang) * window[:, None]
    fused[:, f_pad: f_pad + n_freq] = -np.sin(ang) * window[:, None]
    return fused


# ------------------------------------------------------------------
# Pallas kernels
# ------------------------------------------------------------------
def _finish_tile(fused_tf, mel_ref, out_ref, clamp, f_pad):
    """fused_tf: [T_tile, 2*F_pad] (real | imag). Emits [n_mels, T_tile]."""
    real = fused_tf[:, :f_pad]                       # lane-aligned slices
    imag = fused_tf[:, f_pad:]
    mag_ft = jnp.sqrt(real * real + imag * imag).T   # [F_pad, T_tile]
    mel = jnp.dot(mel_ref[...], mag_ft, preferred_element_type=jnp.float32)
    out_ref[0] = jnp.log(jnp.maximum(mel, clamp))    # [n_mels, T_tile]


def make_framed_kernel(clamp, hop, n_sub, f_pad, t_tile):
    """In-kernel framing path (n_fft % hop == 0). Inputs:
       a_main [1, T_tile, hop], a_halo [1, HALO, hop] (overlap rows),
       dft [n_fft, 2*F_pad], mel [n_mels, F_pad]."""
    def kernel(a_main_ref, a_halo_ref, dft_ref, mel_ref, out_ref):
        a = jnp.concatenate([a_main_ref[0], a_halo_ref[0]], axis=0)
        fused = jnp.zeros((t_tile, 2 * f_pad), jnp.float32)
        for j in range(n_sub):                       # n_sub = n_fft // hop
            a_j = a[j:j + t_tile, :]                 # frames shifted by j rows
            w_j = dft_ref[pl.ds(j * hop, hop), :]    # matching DFT row block
            fused = fused + jnp.dot(a_j, w_j,
                                    preferred_element_type=jnp.float32)
        _finish_tile(fused, mel_ref, out_ref, clamp, f_pad)
    return kernel


def make_gathered_kernel(clamp, f_pad):
    """Fallback path (n_fft % hop != 0): frames pre-gathered in wrapper."""
    def kernel(frames_ref, dft_ref, mel_ref, out_ref):
        fused = jnp.dot(frames_ref[0], dft_ref[...],
                        preferred_element_type=jnp.float32)
        _finish_tile(fused, mel_ref, out_ref, clamp, f_pad)
    return kernel


# ------------------------------------------------------------------
# Wrapper
# ------------------------------------------------------------------
def mel_spectrogram(audio,
                    n_mel_channels=32,
                    sampling_rate=16000,
                    win_length=128,
                    hop_length=32,
                    n_fft=None,
                    mel_fmin=0.0,
                    mel_fmax=None,
                    clamp=1e-5,
                    time_tile=256,
                    matmul_dtype=jnp.float32):
    """audio: [B, L] float32 -> log-mel [B, n_mel_channels, T_frames]."""
    n_fft = win_length if n_fft is None else n_fft
    B, L = audio.shape
    hop = hop_length
    pad = n_fft // 2
    n_freq = 1 + n_fft // 2
    f_pad = _round_up(n_freq, 128)

    # --- constant matrices ---
    window = hann_window_periodic(win_length)
    if win_length < n_fft:  # torch.stft centers the window inside the frame
        lpad = (n_fft - win_length) // 2
        window = np.pad(window, (lpad, n_fft - win_length - lpad))
    dft_fused = build_fused_dft(n_fft, window, f_pad)               # [n_fft, 2*F_pad]
    mel_basis = mel_filterbank_htk(sampling_rate, n_fft,
                                   n_mel_channels, mel_fmin, mel_fmax)
    mel_pad = np.zeros((n_mel_channels, f_pad), np.float32)
    mel_pad[:, :n_freq] = mel_basis                                 # [n_mels, F_pad]

    n_frames = 1 + (L + 2 * pad - n_fft) // hop

    framed_path = (n_fft % hop == 0)
    n_sub = n_fft // hop if framed_path else 0
    halo = _round_up(max(n_sub - 1, 1), 8) if framed_path else 8

    # --- time tiling (large tiles, lane-dense output) ---
    t_cap = _round_up(n_frames, 8)
    t_tile = max(8, min(time_tile, t_cap))
    t_tile = _round_up(t_tile, halo)
    if t_tile < t_cap:                       # multi-tile -> keep lanes aligned
        t_tile = _round_up(t_tile, int(np.lcm(128, halo)))
    t_pad = _round_up(n_frames, t_tile)

    dft_fused = jnp.asarray(dft_fused, dtype=matmul_dtype)
    mel_pad = jnp.asarray(mel_pad)

    padded = jnp.pad(audio.astype(jnp.float32), ((0, 0), (pad, pad)),
                     mode="reflect")                                # torch.stft center=True

    out_shape = jax.ShapeDtypeStruct((B, n_mel_channels, t_pad), jnp.float32)
    out_block = pl.BlockSpec((1, n_mel_channels, t_tile), lambda b, t: (b, 0, t))
    dft_spec = pl.BlockSpec(dft_fused.shape, lambda b, t: (0, 0))
    mel_spec = pl.BlockSpec(mel_pad.shape, lambda b, t: (0, 0))
    cparams = pltpu.CompilerParams(
        dimension_semantics=("parallel", "parallel"))
    grid = (B, t_pad // t_tile)

    if framed_path:
        # Reshape audio to hop-sample rows; the kernel rebuilds frames via
        # n_fft/hop shifted sub-matmuls -> no 4x frame blowup in HBM.
        s_alloc = t_pad + halo
        total = s_alloc * hop
        cur = padded.shape[1]
        if total > cur:
            padded = jnp.pad(padded, ((0, 0), (0, total - cur)))
        elif total < cur:
            padded = padded[:, :total]       # trailing samples unused by any frame
        a = padded.reshape(B, s_alloc, hop).astype(matmul_dtype)    # [B, S, hop]

        blocks_per_tile = t_tile // halo
        out = pl.pallas_call(
            make_framed_kernel(clamp, hop, n_sub, f_pad, t_tile),
            out_shape=out_shape,
            grid=grid,
            in_specs=[
                pl.BlockSpec((1, t_tile, hop), lambda b, t: (b, t, 0)),
                pl.BlockSpec((1, halo, hop),
                             lambda b, t: (b, (t + 1) * blocks_per_tile, 0)),
                dft_spec, mel_spec,
            ],
            out_specs=out_block,
            compiler_params=cparams,
        )(a, a, dft_fused, mel_pad)
    else:
        # Fallback: wrapper-side framing gather (n_fft not a multiple of hop).
        need = (t_pad - 1) * hop + n_fft
        if need > padded.shape[1]:
            padded = jnp.pad(padded, ((0, 0), (0, need - padded.shape[1])))
        idx = np.arange(t_pad)[:, None] * hop + np.arange(n_fft)[None, :]
        frames = padded[:, idx].astype(matmul_dtype)                # [B, T_pad, n_fft]
        out = pl.pallas_call(
            make_gathered_kernel(clamp, f_pad),
            out_shape=out_shape,
            grid=grid,
            in_specs=[pl.BlockSpec((1, t_tile, n_fft), lambda b, t: (b, t, 0)),
                      dft_spec, mel_spec],
            out_specs=out_block,
            compiler_params=cparams,
        )(frames, dft_fused, mel_pad)

    # drop padded tail frames; kernel already emits PyTorch's [B, n_mels, T]
    return out[:, :, :n_frames]
    # TODO(synk): keyshift != 0 / speed != 1 branch (resampled STFT + freq-axis
    # resize + win_length rescale) not implemented; default forward path only.
    # TODO(synk): is_half=True (fp16 cast before log) not implemented.


# ------------------------------------------------------------------
# Pure-numpy reference (for correctness check only)
# ------------------------------------------------------------------
def _reference_logmel_np(audio_np, n_mels, sr, win_length, hop, n_fft,
                         fmin, fmax, clamp):
    n_fft = win_length if n_fft is None else n_fft
    pad = n_fft // 2
    window = hann_window_periodic(win_length)
    if win_length < n_fft:
        lpad = (n_fft - win_length) // 2
        window = np.pad(window, (lpad, n_fft - win_length - lpad))
    mel_b = mel_filterbank_htk(sr, n_fft, n_mels, fmin, fmax).astype(np.float64)
    outs = []
    for x in np.asarray(audio_np, dtype=np.float64):
        xp = np.pad(x, (pad, pad), mode="reflect")
        n_frames = 1 + (len(xp) - n_fft) // hop
        frames = np.stack([xp[t * hop: t * hop + n_fft] for t in range(n_frames)])
        spec = np.fft.rfft(frames * window[None, :], n=n_fft, axis=1)
        mag = np.abs(spec)                               # [T, n_freq]
        mel_out = mel_b @ mag.T                          # [n_mels, T]
        outs.append(np.log(np.maximum(mel_out, clamp)))
    return np.stack(outs)


if __name__ == "__main__":
    key = jax.random.PRNGKey(0)
    B, L = 2, 256
    audio = jax.random.normal(key, (B, L), dtype=jnp.float32)

    log_mel = mel_spectrogram(audio,
                              n_mel_channels=32,
                              sampling_rate=16000,
                              win_length=128,
                              hop_length=32,
                              clamp=1e-5)
    log_mel = jax.block_until_ready(log_mel)

    expected_frames = 1 + L // 32
    assert log_mel.shape == (B, 32, expected_frames), log_mel.shape
    assert log_mel.dtype == jnp.float32
    assert bool(jnp.all(jnp.isfinite(log_mel)))

    ref = _reference_logmel_np(np.asarray(audio), 32, 16000, 128, 32, None,
                               0.0, None, 1e-5)
    max_err = float(np.max(np.abs(np.asarray(log_mel) - ref)))
    assert max_err < 5e-2, f"max abs error vs reference: {max_err}"

    print("KERNEL_OK")
</pallas_src>

<mosaic_0001>
module attributes {stable_mosaic.version = 11 : i64} {
  func.func @kernel(%arg0: i32, %arg1: i32, %arg2: memref<1x16x32xf32, #tpu.memory_space<vmem>>, %arg3: memref<1x8x32xf32, #tpu.memory_space<vmem>>, %arg4: memref<128x256xf32, #tpu.memory_space<vmem>>, %arg5: memref<32x128xf32, #tpu.memory_space<vmem>>, %arg6: memref<1x32x16xf32, #tpu.memory_space<vmem>>) attributes {dimension_semantics = [#tpu.dimension_semantics<parallel>, #tpu.dimension_semantics<parallel>], iteration_bounds = array<i64: 2, 1>, scalar_prefetch = 0 : i64, scratch_operands = 0 : i64, tpu.core_type = #tpu.core_type<tc>, window_params = [{transform_indices = @transform_0, window_bounds = array<i64: 1, 16, 32>}, {transform_indices = @transform_1, window_bounds = array<i64: 1, 8, 32>}, {pipeline_mode = #tpu.pipeline_mode<synchronous>, transform_indices = @transform_2, window_bounds = array<i64: 128, 256>}, {pipeline_mode = #tpu.pipeline_mode<synchronous>, transform_indices = @transform_3, window_bounds = array<i64: 32, 128>}, {transform_indices = @transform_4, window_bounds = array<i64: 1, 32, 16>}]} {
    %c0 = arith.constant 0 : index
    %c0_0 = arith.constant 0 : index
    %c0_1 = arith.constant 0 : index
    %0 = vector.load %arg2[%c0, %c0_0, %c0_1] : memref<1x16x32xf32, #tpu.memory_space<vmem>>, vector<1x16x32xf32>
    %1 = vector.shape_cast %0 : vector<1x16x32xf32> to vector<16x32xf32>
    %c0_2 = arith.constant 0 : index
    %c0_3 = arith.constant 0 : index
    %c0_4 = arith.constant 0 : index
    %2 = vector.load %arg3[%c0_2, %c0_3, %c0_4] : memref<1x8x32xf32, #tpu.memory_space<vmem>>, vector<1x8x32xf32>
    %3 = vector.shape_cast %2 : vector<1x8x32xf32> to vector<8x32xf32>
    %4 = tpu.concatenate %1, %3 in 0 : vector<16x32xf32>, vector<8x32xf32> -> vector<24x32xf32>
    %cst = arith.constant 0.000000e+00 : f32
    %5 = vector.broadcast %cst : f32 to vector<16x256xf32>
    %6 = vector.extract_strided_slice %4 {offsets = [0, 0], sizes = [16, 32], strides = [1, 1]} : vector<24x32xf32> to vector<16x32xf32>
    %c0_5 = arith.constant 0 : index
    %c0_6 = arith.constant 0 : index
    %7 = vector.load %arg4[%c0_5, %c0_6] : memref<128x256xf32, #tpu.memory_space<vmem>>, vector<32x256xf32>
    %cst_7 = arith.constant dense<0.000000e+00> : vector<16x256xf32>
    %8 = tpu.matmul %6, %7, %cst_7 {dimension_numbers = #tpu.dot_dimension_numbers<[1], [0], [0], [1], [0, 0, 1, 1], [], []>} : vector<16x32xf32>, vector<32x256xf32>, vector<16x256xf32> -> vector<16x256xf32>
    %9 = arith.addf %5, %8 : vector<16x256xf32>
    %10 = vector.extract_strided_slice %4 {offsets = [1, 0], sizes = [16, 32], strides = [1, 1]} : vector<24x32xf32> to vector<16x32xf32>
    %c32 = arith.constant 32 : index
    %c0_8 = arith.constant 0 : index
    %11 = vector.load %arg4[%c32, %c0_8] : memref<128x256xf32, #tpu.memory_space<vmem>>, vector<32x256xf32>
    %cst_9 = arith.constant dense<0.000000e+00> : vector<16x256xf32>
    %12 = tpu.matmul %10, %11, %cst_9 {dimension_numbers = #tpu.dot_dimension_numbers<[1], [0], [0], [1], [0, 0, 1, 1], [], []>} : vector<16x32xf32>, vector<32x256xf32>, vector<16x256xf32> -> vector<16x256xf32>
    %13 = arith.addf %9, %12 : vector<16x256xf32>
    %14 = vector.extract_strided_slice %4 {offsets = [2, 0], sizes = [16, 32], strides = [1, 1]} : vector<24x32xf32> to vector<16x32xf32>
    %c64 = arith.constant 64 : index
    %c0_10 = arith.constant 0 : index
    %15 = vector.load %arg4[%c64, %c0_10] : memref<128x256xf32, #tpu.memory_space<vmem>>, vector<32x256xf32>
    %cst_11 = arith.constant dense<0.000000e+00> : vector<16x256xf32>
    %16 = tpu.matmul %14, %15, %cst_11 {dimension_numbers = #tpu.dot_dimension_numbers<[1], [0], [0], [1], [0, 0, 1, 1], [], []>} : vector<16x32xf32>, vector<32x256xf32>, vector<16x256xf32> -> vector<16x256xf32>
    %17 = arith.addf %13, %16 : vector<16x256xf32>
    %18 = vector.extract_strided_slice %4 {offsets = [3, 0], sizes = [16, 32], strides = [1, 1]} : vector<24x32xf32> to vector<16x32xf32>
    %c96 = arith.constant 96 : index
    %c0_12 = arith.constant 0 : index
    %19 = vector.load %arg4[%c96, %c0_12] : memref<128x256xf32, #tpu.memory_space<vmem>>, vector<32x256xf32>
    %cst_13 = arith.constant dense<0.000000e+00> : vector<16x256xf32>
    %20 = tpu.matmul %18, %19, %cst_13 {dimension_numbers = #tpu.dot_dimension_numbers<[1], [0], [0], [1], [0, 0, 1, 1], [], []>} : vector<16x32xf32>, vector<32x256xf32>, vector<16x256xf32> -> vector<16x256xf32>
    %21 = arith.addf %17, %20 : vector<16x256xf32>
    %22 = vector.extract_strided_slice %21 {offsets = [0, 0], sizes = [16, 128], strides = [1, 1]} : vector<16x256xf32> to vector<16x128xf32>
    %23 = vector.extract_strided_slice %21 {offsets = [0, 128], sizes = [16, 128], strides = [1, 1]} : vector<16x256xf32> to vector<16x128xf32>
    %24 = arith.mulf %22, %22 : vector<16x128xf32>
    %25 = arith.mulf %23, %23 : vector<16x128xf32>
    %26 = arith.addf %24, %25 : vector<16x128xf32>
    %27 = math.sqrt %26 : vector<16x128xf32>
    %28 = tpu.transpose %27, [1, 0] : vector<16x128xf32> -> vector<128x16xf32>
    %c0_14 = arith.constant 0 : index
    %c0_15 = arith.constant 0 : index
    %29 = vector.load %arg5[%c0_14, %c0_15] : memref<32x128xf32, #tpu.memory_space<vmem>>, vector<32x128xf32>
    %cst_16 = arith.constant dense<0.000000e+00> : vector<32x16xf32>
    %30 = tpu.matmul %29, %28, %cst_16 {dimension_numbers = #tpu.dot_dimension_numbers<[1], [0], [0], [1], [0, 0, 1, 1], [], []>} : vector<32x128xf32>, vector<128x16xf32>, vector<32x16xf32> -> vector<32x16xf32>
    %cst_17 = arith.constant 9.99999974E-6 : f32
    %31 = vector.broadcast %cst_17 : f32 to vector<32x16xf32>
    %32 = arith.maximumf %30, %31 : vector<32x16xf32>
    %33 = math.log %32 : vector<32x16xf32>
    %c0_18 = arith.constant 0 : index
    %c0_19 = arith.constant 0 : index
    %c0_20 = arith.constant 0 : index
    %34 = vector.load %arg6[%c0_18, %c0_19, %c0_20] : memref<1x32x16xf32, #tpu.memory_space<vmem>>, vector<1x32x16xf32>
    %35 = vector.shape_cast %34 : vector<1x32x16xf32> to vector<32x16xf32>
    %36 = vector.shape_cast %33 : vector<32x16xf32> to vector<1x32x16xf32>
    tpu.vector_store %arg6[%c0_18, %c0_19, %c0_20], %36 {strides = array<i32>} : memref<1x32x16xf32, #tpu.memory_space<vmem>>, vector<1x32x16xf32>,
    return
  }
  func.func @transform_0(%arg0: i32, %arg1: i32) -> (i32, i32, i32) {
    %c0_i32 = arith.constant 0 : i32
    %c0_i32_0 = arith.constant 0 : i32
    return %arg0, %arg1, %c0_i32 : i32, i32, i32
  }
  func.func @transform_1(%arg0: i32, %arg1: i32) -> (i32, i32, i32) {
    %c1_i32 = arith.constant 1 : i32
    %0 = arith.addi %arg1, %c1_i32 : i32
    %c2_i32 = arith.constant 2 : i32
    %1 = arith.muli %0, %c2_i32 : i32
    %c0_i32 = arith.constant 0 : i32
    %c0_i32_0 = arith.constant 0 : i32
    return %arg0, %1, %c0_i32 : i32, i32, i32
  }
  func.func @transform_2(%arg0: i32, %arg1: i32) -> (i32, i32) {
    %c0_i32 = arith.constant 0 : i32
    %c0_i32_0 = arith.constant 0 : i32
    %c0_i32_1 = arith.constant 0 : i32
    return %c0_i32, %c0_i32_0 : i32, i32
  }
  func.func @transform_3(%arg0: i32, %arg1: i32) -> (i32, i32) {
    %c0_i32 = arith.constant 0 : i32
    %c0_i32_0 = arith.constant 0 : i32
    %c0_i32_1 = arith.constant 0 : i32
    return %c0_i32, %c0_i32_0 : i32, i32
  }
  func.func @transform_4(%arg0: i32, %arg1: i32) -> (i32, i32, i32) {
    %c0_i32 = arith.constant 0 : i32
    %c0_i32_0 = arith.constant 0 : i32
    return %arg0, %c0_i32, %arg1 : i32, i32, i32
  }
}

</mosaic_0001>

<bundles_post_ra>
// kernel: tpu_custom_call.1
= control target key start
LH: loop header
LB: loop body
LE: loop exit
PB: predicated region body
PF: predicated region fallthrough
CT: control target
= control target key end

     0   :  { %s1546_s0 = inlined_call_operand.hbm [shape: f32[2,24,32], index: 0, kind: input, shape index: {}]   ;;  %s1547_s1 = inlined_call_operand.hbm [shape: f32[2,24,32], index: 1, kind: input, shape index: {}]   ;;  %s1548_s2 = inlined_call_operand.hbm [shape: f32[128,256], index: 2, kind: input, shape index: {}]   ;;  %s1549_s3 = inlined_call_operand.hbm [shape: f32[32,128], index: 3, kind: input, shape index: {}]   ;;  %s1550_s4 = inlined_call_operand.vmem [shape: f32[2,32,16], index: 4, kind: output, shape index: {}]  }
   0x1   :  { %1554 = sst [smem:[#allocation13_spill]] %s1546_s0 }
   0x2   :  { %1555 = sst [smem:[#allocation14_spill]] %s1548_s2 }
   0x3   :  { %1556 = sst [smem:[#allocation15_spill]] %s1549_s3 }
   0x4   :  { %9 = vsyncpa [#allocation3], 0 }
   0x5   :  { %11 = vsyncpa [#allocation3 + $0x1], 0 }
   0x6   :  { %12 = vsyncpa [#allocation5], 0 }
   0x7   :  { %14 = vsyncpa [#allocation5 + $0x1], 0 }
   0x8   :  { %15 = vsyncpa [#allocation8], 0  ;;  %s1338_s15 = smov 0   ;;  %s1340_s16 = smov 0  }
   0x9   :  { %s1342_s17 = smov 0   ;;  %s1344_s18 = smov 0  }
   0xa   :  { %s1346_s19 = smov 0   ;;  %s1348_s20 = smov 0  }
   0xb LB: > { %s1553_s21 = sadd.s32 4294967295, %s1302_s20   ;;  %p55_p0 = scmp.ne.s32.totalorder %s1286_s16, %s1282_s15  ;;  %s1302_s20 = sphi %s1348_s20, %s21_s20   ;;  %s1298_s19 = sphi %s1346_s19, %s1571_s19   ;;  %s1294_s18 = sphi %s1344_s18, %s1570_s18   ;;  %s1290_s17 = sphi %s1342_s17, %s1569_s17   ;;  %s1286_s16 = sphi %s1340_s16, %s1568_s16   ;;  %s1282_s15 = sphi %s1338_s15, %s1567_s15  }
   0xc   : > { %p1370_p1 = scmp.eq.s32.totalorder %s1553_s21, 0  ;;  %p986_p2 = scmp.ge.s32.totalorder %s1302_s20, 1 }
   0xd   : > { %p168_p3 = scmp.lt.s32.totalorder %s1302_s20, 3  ;;  %s1304_s25 = smov [#allocation6]  }
   0xe   : > { %s1557_s22 = scalar_select %p1370_p1, 1, 0 }
   0xf   : > { %p1378_p4 = por %p1370_p1, %p55_p0  ;;  %p1382_p5 = pnand %p986_p2, %p168_p3 }
  0x10   : > { %s180_s26 = sshll.u32 %s1304_s25, 4  ;;  %s1305_s28 = smov [#allocation7]   ;;  %s181_s26 = int_to_ptr.vmem [resolvable:$true] %s180_s26 }
  0x11   : > { %p1045_p6 = pneg %p1382_p5  ;;  %s193_s29 = sshll.u32 %s1305_s28, 4  ;;  %s194_s29 = int_to_ptr.vmem [resolvable:$true] %s193_s29 }
  0x12   : > { %s1142_s30 = scalar_lea.vmem %s181_s26, 4096  ;;  %p1150_p12 = scmp.lt.s32.totalorder %s181_s26, %s181_s26 }
  0x13   : > { %p1390_p7 = pnand %p1045_p6, %p1370_p1  ;;  %p1143_p9 = scmp.ne.s32.totalorder %s181_s26, %s1142_s30 }
  0x14   : > { %p1151_p13 = scmp.lt.s32.totalorder %s1142_s30, %s1142_s30 }
  0x15   : > { %p1133_p8 = pneg %p1390_p7 }
  0x16   : > { %p1152_p0 = por %p1151_p13, %p1150_p12 }
  0x17   : > { %p1145_p10 = pnand %p1143_p9, %p1133_p8 }
  0x19   : > { %p1146_p11 = pneg %p1145_p10 }
  0x1b   : > { %p1153_p2 = pnand %p1152_p0, %p1146_p11 }
  0x1d   : > { %1156 = shalt.err (!%p1153_p2)
}
  0x1e   : > { %s1306_s5 = smov 256   ;;  %s1307_s6 = smov 16  }
  0x1f   : > { %s1561_s2 = sld [smem:[#allocation14_spill]]  ;;  %s1168_s9 = scalar_lea.vmem %s194_s29, 512 }
  0x20   : > { %p1169_p3 = scmp.ne.s32.totalorder %s194_s29, %s1168_s9  ;;  %p1176_p10 = scmp.lt.s32.totalorder %s194_s29, %s194_s29 }
  0x21   : > { %p1177_p1 = scmp.lt.s32.totalorder %s1168_s9, %s1168_s9 }
  0x22   : > { %p1171_p6 = pnand %p1169_p3, %p1133_p8 }
  0x23   : > { %p1178_p12 = por %p1177_p1, %p1176_p10 }
  0x24   : > { %p1172_p9 = pneg %p1171_p6 }
  0x25   : > { %1048 = dma.hbm_to_vmem [thread:$0]  (!%p1390_p7), %s1561_s2, 4096, %s181_s26, [#allocation5], %s1306_s5, %s1306_s5, %s1307_s6  }
  0x26   : > { %p1179_p11 = pnand %p1178_p12, %p1172_p9 }
  0x28   : > { %1182 = shalt.err (!%p1179_p11)
}
  0x29   : > { %s1308_s10 = smov 128   ;;  %s1309_s11 = smov 8  }
  0x2a   : > { %s1562_s3 = sld [smem:[#allocation15_spill]]  ;;  %s33_s14 = sadd.s32 1, %s1298_s19 }
  0x2b   : > { %s42_s15 = sadd.s32 1, %s1290_s17  ;;  %p35_p1 = scmp.ge.s32.totalorder %s33_s14, 2 }
  0x2c   : > { %p49_p8 = scmp.ne.s32.totalorder %s1290_s17, %s1286_s16  ;;  %p50_p13 = scmp.eq.s32.totalorder %s1302_s20, 0 }
  0x2d   : > { %p1061_p0 = scmp.lt.s32.totalorder %s1302_s20, 2  ;;  %s1573_s14 = smov (%p35_p1, %s33_s14), 0 }
  0x2e   : > { %p51_p2 = por %p50_p13, %p49_p8  ;;  %s1424_s25 = sand.u32 1, %s1290_s17  }
  0x2f   : > { %s37_s26 = ssub.s32 %s1298_s19, %s1573_s14  ;;  %s990_s27 = sshll.u32 %s1424_s25, 4 }
  0x30   : > { %1051 = dma.hbm_to_vmem [thread:$0]  (!%p1390_p7), %s1562_s3, 512, %s194_s29, [#allocation8], %s1308_s10, %s1308_s10, %s1309_s11  }
  0x31   : > { %p40_p3 = scmp.eq.s32.totalorder %s37_s26, 0  ;;  %s1032_s28 = smul.u32 384, %s1298_s19 }
  0x32   : > { %s1563_s0 = sld [smem:[#allocation13_spill]]  ;;  %s211_s7 = scalar_lea.vmem [#allocation2], %s990_s27 }
  0x33   : > { %s1431_s29 = scalar_select %p40_p3, %s1290_s17, %s42_s15  }
  0x34   : > { %s226_s8 = sshll.u32 %s211_s7, 4  ;;  %p1440_p7 = pnand %p1061_p0, %p51_p2  ;;  %s227_s8 = int_to_ptr.vmem [resolvable:$true] %s226_s8 }
  0x35   : > { %s236_s12 = sand.u32 1, %s1302_s20   ;;  %s992_s13 = sshll.u32 %s1424_s25, 3 }
  0x36   : > { %s208_s26 = scalar_lea.sflag [#allocation3], %s1424_s25  ;;  %p1185_p6 = pneg %p1440_p7 }
  0x37   : > { %s1196_s15 = scalar_lea.vmem %s227_s8, 256  ;;  %s1310_s27 = smov [#allocation2]  }
  0x38   : > { %s224_s6 = scalar_lea.hbm %s1563_s0, %s1032_s28  ;;  %p1197_p9 = scmp.ne.s32.totalorder %s227_s8, %s1196_s15 }
  0x39   : > { %s1201_s30 = sshll.u32 %s1310_s27, 4  ;;  %s1202_s30 = int_to_ptr.vmem [resolvable:$false] %s1201_s30 }
  0x3a   : > { %p1199_p10 = pnand %p1197_p9, %p1185_p6  ;;  %s1203_s5 = scalar_lea.vmem %s1202_s30, 512 }
  0x3b   : > { %p1204_p11 = scmp.lt.s32.totalorder %s227_s8, %s1202_s30  ;;  %p1205_p1 = scmp.lt.s32.totalorder %s1203_s5, %s1196_s15 }
  0x3c   : > { %p1200_p12 = pneg %p1199_p10 }
  0x3d   : > { %p1206_p8 = por %p1205_p1, %p1204_p11 }
  0x3f   : > { %p1207_p13 = pnand %p1206_p8, %p1200_p12 }
  0x41   : > { %1210 = shalt.err (!%p1207_p13)
}
  0x42   : > { %1055 = dma.hbm_to_vmem [thread:$0]  (!%p1440_p7), %s224_s6, 256, %s227_s8, %s208_s26, %s1308_s10, %s1308_s10, %s1309_s11  }
  0x43   : > { %s895_s27 = scalar_lea.hbm %s1547_s1, %s1032_s28  ;;  %s240_s0 = scalar_lea.vmem [#allocation4], %s992_s13 }
  0x44   : > { %s896_s21 = scalar_lea.hbm %s895_s27, 256  ;;  %s251_s30 = sshll.u32 %s240_s0, 4  ;;  %s252_s30 = int_to_ptr.vmem [resolvable:$true] %s251_s30 }
  0x45   : > { %s237_s15 = scalar_lea.sflag [#allocation5], %s236_s12  ;;  %s1224_s5 = scalar_lea.vmem %s252_s30, 128 }
  0x46   : > { %p1225_p0 = scmp.ne.s32.totalorder %s252_s30, %s1224_s5  ;;  %s1311_s2 = smov [#allocation4]  }
  0x47   : > { %s1229_s3 = sshll.u32 %s1311_s2, 4  ;;  %s1230_s3 = int_to_ptr.vmem [resolvable:$false] %s1229_s3 }
  0x48   : > { %p1227_p2 = pnand %p1225_p0, %p1185_p6  ;;  %s1231_s10 = scalar_lea.vmem %s1230_s3, 256 }
  0x49   : > { %p1232_p9 = scmp.lt.s32.totalorder %s252_s30, %s1230_s3  ;;  %p1233_p10 = scmp.lt.s32.totalorder %s1231_s10, %s1224_s5 }
  0x4a   : > { %p1228_p3 = pneg %p1227_p2 }
  0x4b   : > { %p1234_p12 = por %p1233_p10, %p1232_p9 }
  0x4d   : > { %p1235_p11 = pnand %p1234_p12, %p1228_p3 }
  0x4f   : > { %1238 = shalt.err (!%p1235_p11)
}
  0x50   : > { %1058 = dma.hbm_to_vmem [thread:$0]  (!%p1440_p7), %s896_s21, 128, %s252_s30, %s237_s15  }
  0x51   : > { %260 = sbr.rel (%p1382_p5) target bundleno = 566 (0x236), region = 36  ;;  %s262_s0 = sand.u32 (!%p1382_p5), 1, %s1286_s16  }
  0x52   : > { %s995_s11 = sshll.u32 (!%p1382_p5), %s262_s0, 4  ;;  %s263_s28 = scalar_lea.sflag (!%p1382_p5), [#allocation3], %s262_s0 }
  0x53   : > { %s1470_s6 = scalar_lea.vmem (!%p1382_p5), [#allocation2], %s995_s11 }
  0x56   : > { %1265 = dma.done.wait (%p1378_p4), %s263_s28, 256  }
  0x57   : > { %1267 = vsyncadd (%p1378_p4), %s263_s28, 4294967040  ;;  %s1565_s2 = sadd.s32 4294967295, %s1302_s20   ;;  %s996_s21 = sshll.u32 %s262_s0, 3 }
  0x58   : > { %s271_s3 = sand.u32 1, %s1565_s2   ;;  %s1478_s24 = scalar_lea.vmem [#allocation4], %s996_s21 }
  0x59   : > { %s272_s8 = scalar_lea.sflag [#allocation5], %s271_s3 }
  0x5a   : > { %1269 = dma.done.wait (%p1378_p4), %s272_s8, 128  }
  0x5b   : > { %1271 = vsyncadd (%p1378_p4), %s272_s8, 4294967168  ;;  %p1566_p5 = scmp.ne.s32.totalorder %s1557_s22, 0 }
  0x5d   : > { %1273 = dma.done.wait (%p1566_p5), [#allocation5], 4096  }
  0x5e   : > { %1275 = vsyncadd (%p1566_p5), [#allocation5], 4294963200 }
  0x5f   : > { %1277 = dma.done.wait (%p1566_p5), [#allocation8], 512  }
  0x60   : > { %1279 = vsyncadd (%p1566_p5), [#allocation8], 4294966784  ;;  %v1312_v0 = vmov 0.0   ;;  %v349_v1 = vld [vmem:[#allocation6 + $0x78] sm:$0xff]  ;;  %v348_v3 = vld [vmem:[#allocation6 + $0x70] sm:$0xff]  ;;  %vm353_vm0 = vcmask 1046528  }
  0x61   : > { %428 = vmatprep.mubr.f32.mxu0 %v1312_v0  ;;  %509 = vmatprep.mubr.f32.mxu1 %v1312_v0  ;;  %v341_v2 = vld [vmem:[#allocation6 + $0x38] sm:$0xff]  ;;  %v340_v4 = vld [vmem:[#allocation6 + $0x30] sm:$0xff]  ;;  %v347_v5 = vld [vmem:[#allocation6 + $0x68] sm:$0xff]  ;;  %vm359_vm1 = vcmask 261120   ;;  %vm530_vm2 = vcmask 1045504   ;;  %vm629_vm3 = vcmask 1044480  }
  0x62   : > { %388 = vmatprep.subr.mxu0 %v349_v1  ;;  %469 = vmatprep.subr.mxu1 %v341_v2  ;;  %v339_v6 = vld [vmem:[#allocation6 + $0x28] sm:$0xff]  ;;  %v346_v7 = vld [vmem:[#allocation6 + $0x60] sm:$0xff]  ;;  %v345_v9 = vld [vmem:[#allocation6 + $0x58] sm:$0xff]  ;;  %p323_p4 = scmp.lt.s32.totalorder %s1294_s18, 1  ;;  %vm841_vm8 = vcmask 130048  }
  0x63   : > { %389 = vmatpush1.msra.mxu0 %v348_v3  ;;  %470 = vmatpush1.msra.mxu1 %v340_v4  ;;  %v338_v8 = vld [vmem:[#allocation6 + $0x20] sm:$0xff]  ;;  %v337_v10 = vld [vmem:[#allocation6 + $0x18] sm:$0xff]  ;;  %v344_v11 = vld [vmem:[#allocation6 + $0x50] sm:$0xff] }
  0x64   : > { %390 = vmatprep.subr.mxu0 %v347_v5  ;;  %471 = vmatprep.subr.mxu1 %v339_v6  ;;  %v336_v12 = vld [vmem:[#allocation6 + $0x10] sm:$0xff]  ;;  %v343_v13 = vld [vmem:[#allocation6 + $0x48] sm:$0xff]  ;;  %v342_v15 = vld [vmem:[#allocation6 + $0x40] sm:$0xff]  ;;  %s1575_s18 = smov (!%p323_p4, %s1294_s18), 1 }
  0x65   : > { %391 = vmatpush1.msra.mxu0 %v346_v7  ;;  %472 = vmatpush1.msra.mxu1 %v338_v8  ;;  %v335_v14 = vld [vmem:[#allocation6 + $0x8] sm:$0xff]  ;;  %v334_v16 = vld [vmem:[#allocation6] sm:$0xff]  ;;  %v529_v21 = vld [vmem:[#allocation6 + $0xb8] sm:$0xff]  ;;  %s1011_s22 = sshll.u32 %s1575_s18, 5 }
  0x66   : > { %392 = vmatprep.subr.mxu0 %v345_v9  ;;  %473 = vmatprep.subr.mxu1 %v337_v10  ;;  %v331_v17 = vld [vmem:[%s1470_s6] sm:$0xff]  ;;  %v1496_v18 = vld [vmem:[%s1470_s6 + $0x8] sm:$0xff]  ;;  %s330_s12 = scalar_lea.vmem %s1550_s4, %s1011_s22 }
  0x67   : > { %393 = vmatpush1.msra.mxu0 %v344_v11  ;;  %474 = vmatpush1.msra.mxu1 %v336_v12  ;;  %v354_v19 = vrot.slane %v331_v17, 1  ;;  %v355_v20 = vrot.slane %v1496_v18, 1  ;;  %v628_v22 = vld [vmem:[#allocation6 + $0xf8] sm:$0xff]  ;;  %v528_v24 = vld [vmem:[#allocation6 + $0xb0] sm:$0xff]  ;;  %v527_v27 = vld [vmem:[#allocation6 + $0xa8] sm:$0xff]  ;;  %v531_v37 = vrot.slane %v331_v17, 2 }
  0x68   : > { %394 = vmatprep.subr.mxu0 %v343_v13  ;;  %475 = vmatprep.subr.mxu1 %v335_v14  ;;  %v627_v25 = vld [vmem:[#allocation6 + $0xf0] sm:$0xff]  ;;  %v626_v28 = vld [vmem:[#allocation6 + $0xe8] sm:$0xff]  ;;  %v526_v30 = vld [vmem:[#allocation6 + $0xa0] sm:$0xff]  ;;  %v532_v38 = vrot.slane %v1496_v18, 2  ;;  %v630_v39 = vrot.slane %v331_v17, 3  ;;  %v631_v40 = vrot.slane %v1496_v18, 3 }
  0x69   : > { %395 = vmatpush1.msra.mxu0 %v342_v15  ;;  %476 = vmatpush1.msra.mxu1 %v334_v16  ;;  %v356_v23 = vsel %vm353_vm0, %v354_v19, %v355_v20  ;;  %v333_v26 = vld [vmem:[%s1478_s24] sm:$0xff]  ;;  %v625_v31 = vld [vmem:[#allocation6 + $0xe0] sm:$0xff]  ;;  %v523_v41 = vld [vmem:[#allocation6 + $0x88] sm:$0xff] }
  0x6a   : > { %1001 = vmatmul.mubr.msk.f32.vlgmr.msra.gmra.mxu0 %vm359_vm1, %v356_v23  ;;  %1003 = vmatmul.mubr.msk.f32.vlgmr.msra.gmra.mxu1 %vm359_vm1, %v331_v17  ;;  %v357_v29 = vrot.slane %v333_v26, 1  ;;  %v525_v33 = vld [vmem:[#allocation6 + $0x98] sm:$0xff]  ;;  %v524_v35 = vld [vmem:[#allocation6 + $0x90] sm:$0xff]  ;;  %v622_v42 = vld [vmem:[#allocation6 + $0xc8] sm:$0xff]  ;;  %v533_v45 = vsel %vm530_vm2, %v531_v37, %v532_v38  ;;  %v632_v46 = vsel %vm629_vm3, %v630_v39, %v631_v40  ;;  %v534_v47 = vrot.slane %v333_v26, 2 }
  0x6b   : > { %564 = vmatprep.subr.mxu0 %v529_v21  ;;  %663 = vmatprep.subr.mxu1 %v628_v22  ;;  %v624_v34 = vld [vmem:[#allocation6 + $0xd8] sm:$0xff]  ;;  %v623_v36 = vld [vmem:[#allocation6 + $0xd0] sm:$0xff]  ;;  %v522_v43 = vld [vmem:[#allocation6 + $0x80] sm:$0xff]  ;;  %v633_v48 = vrot.slane %v333_v26, 3 }
  0x6c   : > { %565 = vmatpush1.msra.mxu0 %v528_v24  ;;  %664 = vmatpush1.msra.mxu1 %v627_v25  ;;  %v358_v32 = vsel %vm353_vm0, %v355_v20, %v357_v29  ;;  %v621_v44 = vld [vmem:[#allocation6 + $0xc0] sm:$0xff]  ;;  %v535_v49 = vsel %vm530_vm2, %v532_v38, %v534_v47  ;;  %v742_v52 = vld [vmem:[#allocation7 + $0x10] sm:$0xff] }
  0x6d   : > { %566 = vmatprep.subr.mxu0 %v527_v27  ;;  %665 = vmatprep.subr.mxu1 %v626_v28  ;;  %v634_v50 = vsel %vm629_vm3, %v631_v40, %v633_v48  ;;  %v740_v51 = vld [vmem:[#allocation7] sm:$0xff] }
  0x6e   : > { %434 = vmatprep.mubr.f32.mxu0 %v1312_v0  ;;  %515 = vmatprep.mubr.f32.mxu1 %v1312_v0 }
  0x6f   : > { %567 = vmatpush1.msra.mxu0 %v526_v30  ;;  %666 = vmatpush1.msra.mxu1 %v625_v31 }
  0x70   : > { %1002 = vmatmul.mubr.msk.f32.gmra.mxu0 %vm359_vm1, %v358_v32  ;;  %1004 = vmatmul.mubr.msk.f32.gmra.mxu1 %vm359_vm1, %v1496_v18 }
  0x71   : > { %568 = vmatprep.subr.mxu0 %v525_v33  ;;  %667 = vmatprep.subr.mxu1 %v624_v34  ;;  %v741_v33 = vld [vmem:[#allocation7 + $0x8] sm:$0xff]  ;;  %v743_v34 = vld [vmem:[#allocation7 + $0x18] sm:$0xff] }
  0x72   : > { %569 = vmatpush1.msra.mxu0 %v524_v35  ;;  %668 = vmatpush1.msra.mxu1 %v623_v36 }
  0x73   : > { %570 = vmatprep.subr.mxu0 %v523_v41  ;;  %669 = vmatprep.subr.mxu1 %v622_v42 }
  0x74   : > { %571 = vmatpush1.msra.mxu0 %v522_v43  ;;  %604 = vmatprep.mubr.f32.mxu0 %v1312_v0 }
  0x75   : > { %670 = vmatpush1.msra.mxu1 %v621_v44  ;;  %703 = vmatprep.mubr.f32.mxu1 %v1312_v0 }
  0x76   : > { %1005 = vmatmul.mubr.msk.f32.vlgmr.msra.gmra.mxu0 %vm359_vm1, %v533_v45  ;;  %1007 = vmatmul.mubr.msk.f32.vlgmr.msra.gmra.mxu1 %vm359_vm1, %v632_v46 }
  0x77   : > { %610 = vmatprep.mubr.f32.mxu0 %v1312_v0  ;;  %709 = vmatprep.mubr.f32.mxu1 %v1312_v0 }
  0x7a   : > { %1006 = vmatmul.mubr.msk.f32.gmra.mxu0 %vm359_vm1, %v535_v49  ;;  %1008 = vmatmul.mubr.msk.f32.gmra.mxu1 %vm359_vm1, %v634_v50 }
  0x7b   : > { %1022 = vmatprep.mubr.f32.mxu0 %v740_v51  ;;  %1025 = vmatprep.mubr.f32.mxu1 %v742_v52 }
 0x12a   : > { %v430_v53 = vpop.f32.mrf.mxu0  ;;  %v511_v54 = vpop.f32.mrf.mxu1 }
 0x12b   : > { %v512_v61 = vadd.f32 %v511_v54, %v430_v53 }
 0x12c   : > { %v432_v55 = vpop.f32.mrf.mxu0  ;;  %v513_v56 = vpop.f32.mrf.mxu1 }
 0x12d   : > { %v514_v0 = vadd.f32 %v513_v56, %v432_v55 }
 0x130   : > { %v436_v57 = vpop.f32.mrf.mxu0  ;;  %v517_v58 = vpop.f32.mrf.mxu1 }
 0x131   : > { %v518_v4 = vadd.f32 %v517_v58, %v436_v57 }
 0x132   : > { %v438_v59 = vpop.f32.mrf.mxu0  ;;  %v519_v60 = vpop.f32.mrf.mxu1 }
 0x133   : > { %v520_v9 = vadd.f32 %v519_v60, %v438_v59 }
 0x136   : > { %v606_v62 = vpop.f32.mrf.mxu0  ;;  %v705_v63 = vpop.f32.mrf.mxu1 }
 0x137   : > { %v617_v1 = vadd.f32 %v606_v62, %v512_v61 }
 0x138   : > { %v608_v2 = vpop.f32.mrf.mxu0  ;;  %v707_v3 = vpop.f32.mrf.mxu1 }
 0x139   : > { %v716_v5 = vadd.f32 %v705_v63, %v617_v1  ;;  %v618_v6 = vadd.f32 %v608_v2, %v514_v0 }
 0x13a   : > { %v612_v7 = vpop.f32.mrf.mxu0  ;;  %v711_v8 = vpop.f32.mrf.mxu1 }
 0x13b   : > { %v717_v10 = vadd.f32 %v707_v3, %v618_v6  ;;  %v619_v11 = vadd.f32 %v612_v7, %v518_v4  ;;  %v720_v13 = vmul.f32 %v716_v5, %v716_v5 }
 0x13c   : > { %v614_v12 = vpop.f32.mrf.mxu0  ;;  %v713_v17 = vpop.f32.mrf.mxu1 }
 0x13d   : > { %v722_v14 = vmul.f32 %v717_v10, %v717_v10  ;;  %v718_v15 = vadd.f32 %v711_v8, %v619_v11  ;;  %v620_v16 = vadd.f32 %v614_v12, %v520_v9 }
 0x13f   : > { %v724_v18 = vadd.f32 %v722_v14, %v720_v13  ;;  %v719_v19 = vadd.f32 %v713_v17, %v620_v16  ;;  %v721_v20 = vmul.f32 %v718_v15, %v718_v15 }
 0x141   : > { %1119 = vrsqrt.f32 %v724_v18  ;;  %v723_v21 = vmul.f32 %v719_v19, %v719_v19  ;;  %vm728_vm5 = vcmp.eq.f32.partialorder %v724_v18, inf  ;;  %v731_v31 = vand.u32 2147483648, %v724_v18 }
 0x142   : > { %vm730_vm7 = vcmp.eq.f32.partialorder %v724_v18, 0.0 }
 0x143   : > { %v725_v22 = vadd.f32 %v723_v21, %v721_v20 }
 0x145   : > { %1121 = vrsqrt.f32 %v725_v22  ;;  %vm735_vm4 = vcmp.eq.f32.partialorder %v725_v22, inf  ;;  %v738_v27 = vand.u32 2147483648, %v725_v22  ;;  %vm737_vm6 = vcmp.eq.f32.partialorder %v725_v22, 0.0 }
 0x14e   : > { %v1120_v23 = vpop.eup %1119 }
 0x14f   : > { %v727_v24 = vmul.f32 %v1120_v23, %v724_v18 }
 0x151   : > { %v729_v29 = vsel %vm728_vm5, %v724_v18, %v727_v24 }
 0x152   : > { %v1122_v25 = vpop.eup %1121  ;;  %v732_v32 = vsel %vm730_vm7, %v731_v31, %v729_v29 }
 0x153   : > { %v734_v26 = vmul.f32 %v1122_v25, %v725_v22 }
 0x155   : > { %v736_v28 = vsel %vm735_vm4, %v725_v22, %v734_v26 }
 0x156   : > { %v739_v30 = vsel %vm737_vm6, %v738_v27, %v736_v28 }
 0x157   : > { %1018 = vmatprep.subr.mxu0 %v739_v30  ;;  %1028 = vmatprep.subr.mxu1 %v739_v30 }
 0x158   : > { %1019 = vmatpush3.xpose.msra.mxu0 %v739_v30  ;;  %1030 = vmatpush3.xpose.msra.mxu1 %v739_v30 }
 0x159   : > { %1020 = vmatprep.subr.mxu0 %v732_v32  ;;  %1029 = vmatprep.subr.mxu1 %v732_v32 }
 0x15c   : > { %1021 = vmatpush3.xpose.msra.mxu0 %v732_v32  ;;  %1031 = vmatpush3.xpose.msra.mxu1 %v732_v32 }
 0x15f   : > { %1023 = vmatmul.mubr.f32.vlgmr.msra.gmra.mxu0 %v741_v33  ;;  %1026 = vmatmul.mubr.f32.vlgmr.msra.gmra.mxu1 %v743_v34 }
 0x21f   : > { %v1024_v35 = vpop.f32.mrf.mxu0  ;;  %v1027_v36 = vpop.f32.mrf.mxu1 }
 0x220   : > { %v830_v37 = vmax.f32 %v1024_v35, 1e-05  ;;  %v832_v38 = vmax.f32 %v1027_v36, 1e-05 }
 0x221   : > { %v810_v39 = vpop.f32.mrf.mxu0  ;;  %v820_v40 = vpop.f32.mrf.mxu1 }
 0x222   : > { %1123 = vlog2.f32 %v830_v37  ;;  %v829_v41 = vmax.f32 %v810_v39, 1e-05  ;;  %v831_v42 = vmax.f32 %v820_v40, 1e-05 }
 0x223   : > { %1125 = vlog2.f32 %v832_v38 }
 0x224   : > { %1127 = vlog2.f32 %v829_v41 }
 0x225   : > { %1129 = vlog2.f32 %v831_v42 }
 0x22f   : > { %v1124_v43 = vpop.eup %1123 }
 0x230   : > { %v1126_v44 = vpop.eup %1125  ;;  %v836_v45 = vmul.f32 0.6931472, %v1124_v43 }
 0x231   : > { %v1128_v46 = vpop.eup %1127  ;;  %v840_v47 = vmul.f32 0.6931472, %v1126_v44 }
 0x232   : > { %v1130_v48 = vpop.eup %1129  ;;  %843 = vst.msk [vmem:[%s330_s12 + $0x8] sm:$0xff] %vm841_vm8, %v836_v45  ;;  %v834_v49 = vmul.f32 0.6931472, %v1128_v46 }
 0x233   : > { %845 = vst.msk [vmem:[%s330_s12 + $0x18] sm:$0xff] %vm841_vm8, %v840_v47  ;;  %v838_v50 = vmul.f32 0.6931472, %v1130_v48 }
 0x234   : > { %842 = vst.msk [vmem:[%s330_s12] sm:$0xff] %vm841_vm8, %v834_v49 }
 0x235   : > { %844 = vst.msk [vmem:[%s330_s12 + $0x10] sm:$0xff] %vm841_vm8, %v838_v50 }
 0x236 PF: > { %s21_s20 = sadd.s32 1, %s1302_s20   ;;  %s1567_s15 = smov %s1286_s16 }
 0x237   : > { %p18_p7 = scmp.ge.s32.totalorder %s21_s20, 4   ;;  %s1568_s16 = smov %s1290_s17 }
 0x238   : > { %s1569_s17 = smov %s1431_s29  ;;  %s1570_s18 = smov %s1298_s19 }
 0x239   : > { %s1571_s19 = smov %s1573_s14  ;;  %20 = sbr.rel (!%p18_p7) target bundleno = 11 (0xb), region = 97 }
 0x23e   :  { %873 = vsyncpa [#allocation3], 1 }
 0x23f   :  { %875 = vsyncpa [#allocation3 + $0x1], 1 }
 0x240   :  { %876 = vsyncpa [#allocation5], 1 }
 0x241   :  { %878 = vsyncpa [#allocation5 + $0x1], 1 }
 0x242   :  { %879 = vsyncpa [#allocation8], 1 }

</bundles_post_ra>
